<compile_context>
chip_gen: v7x
topology: tpu7x:2x2x1
jax: 0.10.0
libtpu: 0.0.40
codegen_flags: <defaults>
</compile_context>

<pallas_src>
import jax
import jax.numpy as jnp
from jax import lax
from jax.experimental import pallas as pl
from jax.experimental.pallas import tpu as pltpu


# --------------------------------------------------------------------------
# Pallas kernel: channel attention for a chunk of NB batch elements
# --------------------------------------------------------------------------
def _channel_att_kernel(x_ref, w1_ref, w2_ref, o_ref):
    # x_ref : [NB, C, HW]  input chunk (native dtype), C on sublanes, spatial on lanes
    # w1_ref: [C4, C]      fc1 weight (1x1 conv squeezed), C4 = C // 4
    # w2_ref: [C, C4]      fc2 weight
    # o_ref : [NB, C, 1]   sigmoid(channel attention), f32
    x = x_ref[...]                                   # keep native dtype (no full-tile upcast)
    nb = x.shape[0]
    hw = x.shape[-1]

    # Global avg / max pool over the flattened spatial axis (single lane reductions).
    # f32 accumulation is requested on the sum; max runs on the native dtype and only
    # the tiny [NB, C] result is cast.
    avg = jnp.sum(x, axis=-1, dtype=jnp.float32) * (1.0 / hw)   # [NB, C] f32
    mx = jnp.max(x, axis=-1).astype(jnp.float32)                # [NB, C] f32

    # Stack both branches of the whole chunk so fc1/fc2 each run as ONE MXU matmul:
    # rows [0, NB) = avg branch, rows [NB, 2*NB) = max branch.
    pooled = jnp.concatenate([avg, mx], axis=0)                 # [2*NB, C] f32

    # Feed weights to the MXU in their native dtype (bf16 stays bf16); f32 accumulate.
    w1 = w1_ref[...]                                            # [C4, C]
    w2 = w2_ref[...]                                            # [C, C4]
    pooled = pooled.astype(w1.dtype)

    # h = relu(pooled @ w1^T): contraction over C (rhs-transposed dot, MXU-native).
    h = lax.dot_general(pooled, w1, (((1,), (1,)), ((), ())),
                        preferred_element_type=jnp.float32)     # [2*NB, C4]
    h = jnp.maximum(h, 0.0).astype(w2.dtype)

    # z = h @ w2^T: contraction over C4.
    z = lax.dot_general(h, w2, (((1,), (1,)), ((), ())),
                        preferred_element_type=jnp.float32)     # [2*NB, C]

    s = z[:nb, :] + z[nb:, :]                                   # avg-branch + max-branch
    o_ref[...] = jax.nn.sigmoid(s)[:, :, None].astype(o_ref.dtype)


# --------------------------------------------------------------------------
# Wrapper
# --------------------------------------------------------------------------
def _pick_batch_chunk(n, max_nb=8):
    """Largest divisor of n that is <= max_nb while keeping >= 2 grid steps
    (so both TensorCores stay busy on v7x).  Falls back to 1."""
    if n <= 1:
        return max(n, 1)
    best = 1
    for d in range(1, min(n // 2, max_nb) + 1):
        if n % d == 0:
            best = d
    return best


def channel_att(x, w1, w2, *, batch_chunk=None):
    """ChannelAtt forward.

    Args:
      x : [N, C, H, W]  (float32 or bfloat16; bf16 halves HBM traffic, accuracy of
                         the gate is preserved by in-kernel f32 accumulation)
      w1: [C//4, C]     fc1 weight (nn.Conv2d(C, C//4, 1, bias=False).weight squeezed)
      w2: [C, C//4]     fc2 weight
    Returns:
      [N, C, 1, 1] float32 channel-attention map.
    """
    N, C, H, W = x.shape
    HW = H * W
    C4 = w1.shape[0]

    nb = batch_chunk if batch_chunk is not None else _pick_batch_chunk(N)
    assert N % nb == 0, "batch_chunk must divide N"

    # Pure reshape of NCHW (no HBM transpose) -- already the layout we want.
    x2 = x.reshape(N, C, HW)

    out = pl.pallas_call(
        _channel_att_kernel,
        out_shape=jax.ShapeDtypeStruct((N, C, 1), jnp.float32),
        grid_spec=pltpu.PrefetchScalarGridSpec(
            num_scalar_prefetch=0,
            grid=(N // nb,),
            in_specs=[
                # x chunk: default double-buffering hides the (dominant) x DMA.
                pl.BlockSpec((nb, C, HW), lambda n: (n, 0, 0)),
                # Grid-invariant weights: DMA'd once, single-buffered (no wasted VMEM).
                pl.BlockSpec((C4, C), lambda n: (0, 0), pipeline_mode=pl.Buffered(1)),
                pl.BlockSpec((C, C4), lambda n: (0, 0), pipeline_mode=pl.Buffered(1)),
            ],
            out_specs=pl.BlockSpec((nb, C, 1), lambda n: (n, 0, 0)),
        ),
        compiler_params=pltpu.CompilerParams(
            # batch chunks are independent -> shard across TensorCores on v7x
            dimension_semantics=("parallel",),
            # headroom for production C=2304 f32 inputs on v5e (16 MiB default there)
            vmem_limit_bytes=40 * 1024 * 1024,
        ),
    )(x2, w1, w2)

    return out.reshape(N, C, 1, 1)


# --------------------------------------------------------------------------
# Plain-JAX reference (mirrors the PyTorch module exactly)
# --------------------------------------------------------------------------
def reference_channel_att(x, w1, w2):
    x = x.astype(jnp.float32)
    w1 = w1.astype(jnp.float32)
    w2 = w2.astype(jnp.float32)
    avg = jnp.mean(x, axis=(2, 3))                            # AdaptiveAvgPool2d(1)
    mx = jnp.max(x, axis=(2, 3))                              # AdaptiveMaxPool2d(1)

    def mlp(v):                                               # fc2(relu(fc1(v)))
        return jnp.maximum(v @ w1.T, 0.0) @ w2.T

    out = jax.nn.sigmoid(mlp(avg) + mlp(mx))                  # [N, C]
    return out[:, :, None, None]                              # [N, C, 1, 1]


if __name__ == "__main__":
    key = jax.random.PRNGKey(0)
    kx, k1, k2 = jax.random.split(key, 3)

    # Small shapes consistent with the module (real model uses C=2304, H=W=16).
    N, C, H, W = 2, 32, 16, 16

    x = jax.random.normal(kx, (N, C, H, W), jnp.float32)
    w1 = jax.random.normal(k1, (C // 4, C), jnp.float32) * 0.1   # fc1: Conv2d(C, C//4, 1, bias=False)
    w2 = jax.random.normal(k2, (C, C // 4), jnp.float32) * 0.1   # fc2: Conv2d(C//4, C, 1, bias=False)

    ref = reference_channel_att(x, w1, w2)

    # f32 path: exact match vs reference.
    out = channel_att(x, w1, w2)
    jax.block_until_ready(out)
    assert out.shape == (N, C, 1, 1)
    assert jnp.allclose(out, ref, atol=1e-5, rtol=1e-5), \
        "Pallas ChannelAtt (f32) mismatch vs reference"

    # bf16 ingest path (recommended production contract: halves HBM traffic; the
    # kernel still accumulates in f32, so the gate only differs at ~1e-2 level).
    out_bf16 = channel_att(x.astype(jnp.bfloat16),
                           w1.astype(jnp.bfloat16),
                           w2.astype(jnp.bfloat16))
    jax.block_until_ready(out_bf16)
    assert jnp.allclose(out_bf16, ref, atol=3e-2, rtol=3e-2), \
        "Pallas ChannelAtt (bf16) mismatch vs reference"

    print("KERNEL_OK")
</pallas_src>

<mosaic_0001>
module attributes {stable_mosaic.version = 11 : i64} {
  func.func @_channel_att_kernel(%arg0: i32, %arg1: memref<1x32x256xf32, #tpu.memory_space<vmem>>, %arg2: memref<8x32xf32, #tpu.memory_space<vmem>>, %arg3: memref<32x8xf32, #tpu.memory_space<vmem>>, %arg4: memref<1x32x1xf32, #tpu.memory_space<vmem>>) attributes {dimension_semantics = [#tpu.dimension_semantics<parallel>], iteration_bounds = array<i64: 2>, scalar_prefetch = 0 : i64, scratch_operands = 0 : i64, tpu.core_type = #tpu.core_type<tc>, window_params = [{transform_indices = @transform_0, window_bounds = array<i64: 1, 32, 256>}, {pipeline_mode = #tpu.pipeline_mode<synchronous>, transform_indices = @transform_1, window_bounds = array<i64: 8, 32>}, {pipeline_mode = #tpu.pipeline_mode<synchronous>, transform_indices = @transform_2, window_bounds = array<i64: 32, 8>}, {transform_indices = @transform_3, window_bounds = array<i64: 1, 32, 1>}]} {
    %c0 = arith.constant 0 : index
    %c0_0 = arith.constant 0 : index
    %c0_1 = arith.constant 0 : index
    %0 = vector.load %arg1[%c0, %c0_0, %c0_1] : memref<1x32x256xf32, #tpu.memory_space<vmem>>, vector<1x32x256xf32>
    %cst = arith.constant dense<0.000000e+00> : vector<1x32xf32>
    %1 = vector.multi_reduction <add>, %0, %cst [2] : vector<1x32x256xf32> to vector<1x32xf32>
    %cst_2 = arith.constant 3.906250e-03 : f32
    %2 = vector.broadcast %cst_2 : f32 to vector<1x32xf32>
    %3 = arith.mulf %1, %2 : vector<1x32xf32>
    %cst_3 = arith.constant dense<0xFF800000> : vector<1x32xf32>
    %4 = vector.multi_reduction <maximumf>, %0, %cst_3 [2] : vector<1x32x256xf32> to vector<1x32xf32>
    %5 = tpu.concatenate %3, %4 in 0 : vector<1x32xf32>, vector<1x32xf32> -> vector<2x32xf32>
    %c0_4 = arith.constant 0 : index
    %c0_5 = arith.constant 0 : index
    %6 = vector.load %arg2[%c0_4, %c0_5] : memref<8x32xf32, #tpu.memory_space<vmem>>, vector<8x32xf32>
    %c0_6 = arith.constant 0 : index
    %c0_7 = arith.constant 0 : index
    %7 = vector.load %arg3[%c0_6, %c0_7] : memref<32x8xf32, #tpu.memory_space<vmem>>, vector<32x8xf32>
    %cst_8 = arith.constant dense<0.000000e+00> : vector<2x8xf32>
    %8 = tpu.matmul %5, %6, %cst_8 {dimension_numbers = #tpu.dot_dimension_numbers<[1], [1], [0], [0], [0, 0, 1, 0], [], []>} : vector<2x32xf32>, vector<8x32xf32>, vector<2x8xf32> -> vector<2x8xf32>
    %cst_9 = arith.constant 0.000000e+00 : f32
    %9 = vector.broadcast %cst_9 : f32 to vector<2x8xf32>
    %10 = arith.maximumf %8, %9 : vector<2x8xf32>
    %cst_10 = arith.constant dense<0.000000e+00> : vector<2x32xf32>
    %11 = tpu.matmul %10, %7, %cst_10 {dimension_numbers = #tpu.dot_dimension_numbers<[1], [1], [0], [0], [0, 0, 1, 0], [], []>} : vector<2x8xf32>, vector<32x8xf32>, vector<2x32xf32> -> vector<2x32xf32>
    %12 = vector.extract_strided_slice %11 {offsets = [0, 0], sizes = [1, 32], strides = [1, 1]} : vector<2x32xf32> to vector<1x32xf32>
    %13 = vector.extract_strided_slice %11 {offsets = [1, 0], sizes = [1, 32], strides = [1, 1]} : vector<2x32xf32> to vector<1x32xf32>
    %14 = arith.addf %12, %13 : vector<1x32xf32>
    %15 = arith.negf %14 : vector<1x32xf32>
    %16 = math.exp %15 : vector<1x32xf32>
    %cst_11 = arith.constant 1.000000e+00 : f32
    %17 = vector.broadcast %cst_11 : f32 to vector<1x32xf32>
    %18 = arith.addf %17, %16 : vector<1x32xf32>
    %19 = arith.divf %17, %18 : vector<1x32xf32>
    %20 = vector.shape_cast %19 : vector<1x32xf32> to vector<1x32x1xf32>
    %c0_12 = arith.constant 0 : index
    %c0_13 = arith.constant 0 : index
    %c0_14 = arith.constant 0 : index
    %21 = vector.load %arg4[%c0_12, %c0_13, %c0_14] : memref<1x32x1xf32, #tpu.memory_space<vmem>>, vector<1x32x1xf32>
    tpu.vector_store %arg4[%c0_12, %c0_13, %c0_14], %20 {strides = array<i32>} : memref<1x32x1xf32, #tpu.memory_space<vmem>>, vector<1x32x1xf32>,
    return
  }
  func.func @transform_0(%arg0: i32) -> (i32, i32, i32) {
    %c0_i32 = arith.constant 0 : i32
    %c0_i32_0 = arith.constant 0 : i32
    %c0_i32_1 = arith.constant 0 : i32
    return %arg0, %c0_i32, %c0_i32_0 : i32, i32, i32
  }
  func.func @transform_1(%arg0: i32) -> (i32, i32) {
    %c0_i32 = arith.constant 0 : i32
    %c0_i32_0 = arith.constant 0 : i32
    %c0_i32_1 = arith.constant 0 : i32
    return %c0_i32, %c0_i32_0 : i32, i32
  }
  func.func @transform_2(%arg0: i32) -> (i32, i32) {
    %c0_i32 = arith.constant 0 : i32
    %c0_i32_0 = arith.constant 0 : i32
    %c0_i32_1 = arith.constant 0 : i32
    return %c0_i32, %c0_i32_0 : i32, i32
  }
  func.func @transform_3(%arg0: i32) -> (i32, i32, i32) {
    %c0_i32 = arith.constant 0 : i32
    %c0_i32_0 = arith.constant 0 : i32
    %c0_i32_1 = arith.constant 0 : i32
    return %arg0, %c0_i32, %c0_i32_0 : i32, i32, i32
  }
}

</mosaic_0001>

<bundles_post_ra>
// kernel: tpu_custom_call.1
= control target key start
LH: loop header
LB: loop body
LE: loop exit
PB: predicated region body
PF: predicated region fallthrough
CT: control target
= control target key end

     0   :  { %8 = vsyncpa [#allocation3], 0  ;;  %s878_s0 = inlined_call_operand.hbm [shape: f32[2,32,256], index: 0, kind: input, shape index: {}]   ;;  %s879_s1 = inlined_call_operand.vmem [shape: f32[8,32], index: 1, kind: input, shape index: {}]   ;;  %s880_s2 = inlined_call_operand.vmem [shape: f32[32,8], index: 2, kind: input, shape index: {}]   ;;  %s881_s3 = inlined_call_operand.vmem [shape: f32[2,32,1], index: 3, kind: output, shape index: {}]  }
   0x1   :  { %10 = vsyncpa [#allocation3 + $0x1], 0  ;;  %s748_s12 = smov 0   ;;  %s750_s13 = smov 0  }
   0x2   :  { %s752_s14 = smov 0   ;;  %s754_s15 = smov 0  }
   0x3 LB: > { %s767_s16 = sadd.s32 4294967295, %s720_s15   ;;  %s770_s17 = sadd.s32 1, %s720_s15   ;;  %s720_s15 = sphi %s754_s15, %s888_s15   ;;  %s716_s14 = sphi %s752_s14, %s887_s14   ;;  %s712_s13 = sphi %s750_s13, %s886_s13   ;;  %s708_s12 = sphi %s748_s12, %s885_s12  }
   0x4   : > { %s20_s18 = ssub.s32 %s720_s15, %s770_s17  ;;  %s23_s19 = sadd.s32 1, %s716_s14 }
   0x5   : > { %p21_p0 = scmp.eq.s32.totalorder %s20_s18, 0  ;;  %p30_p1 = scmp.ne.s32.totalorder %s716_s14, %s712_s13 }
   0x6   : > { %p31_p2 = scmp.eq.s32.totalorder %s720_s15, 0  ;;  %p36_p3 = scmp.ne.s32.totalorder %s712_s13, %s708_s12 }
   0x7   : > { %s780_s20 = scalar_select %p21_p0, %s716_s14, %s23_s19  }
   0x8   : > { %p32_p4 = por %p31_p2, %p30_p1  ;;  %p37_p5 = scmp.eq.s32.totalorder %s767_s16, 0 }
   0x9   : > { %p614_p6 = scmp.lt.s32.totalorder %s720_s15, 2  ;;  %s134_s22 = sand.u32 1, %s716_s14  }
   0xa   : > { %p784_p7 = por %p37_p5, %p36_p3  ;;  %s558_s23 = sshll.u32 %s134_s22, 6 }
   0xb   : > { %s575_s24 = sshll.u32 %s720_s15, 10  ;;  %s138_s28 = scalar_lea.vmem [#allocation2], %s558_s23 }
   0xc   : > { %s793_s27 = scalar_lea.hbm %s878_s0, %s575_s24  ;;  %s145_s29 = sshll.u32 %s138_s28, 4  ;;  %s795_s29 = int_to_ptr.vmem [resolvable:$true] %s145_s29 }
   0xd   : > { %p797_p8 = pnand %p614_p6, %p32_p4  ;;  %s802_s4 = scalar_lea.sflag [#allocation3], %s134_s22 }
   0xe   : > { %s656_s5 = scalar_lea.hbm %s793_s27, 1024  ;;  %s661_s8 = scalar_lea.hbm %s878_s0, 2048 }
   0xf   : > { %p657_p10 = scmp.ne.s32.totalorder %s793_s27, %s656_s5  ;;  %p658_p11 = pneg %p797_p8 }
  0x10   : > { %p662_p0 = scmp.lt.u32.totalorder %s793_s27, %s878_s0  ;;  %p663_p1 = scmp.lt.u32.totalorder %s661_s8, %s656_s5 }
  0x11   : > { %p659_p12 = pnand %p658_p11, %p657_p10  ;;  %p665_p3 = scmp.lt.u32.totalorder %s656_s5, %s793_s27 }
  0x12   : > { %p664_p2 = por %p663_p1, %p662_p0 }
  0x13   : > { %p660_p13 = pneg %p659_p12 }
  0x14   : > { %p666_p4 = por %p665_p3, %p664_p2 }
  0x16   : > { %p667_p5 = pnand %p666_p4, %p660_p13 }
  0x18   : > { %670 = shalt.err (!%p667_p5)
}
  0x19   : > { %s671_s11 = scalar_lea.vmem %s795_s29, 1024  ;;  %s722_s12 = smov [#allocation2]  }
  0x1a   : > { %p672_p6 = scmp.ne.s32.totalorder %s795_s29, %s671_s11  ;;  %s676_s18 = sshll.u32 %s722_s12, 4  ;;  %s677_s18 = int_to_ptr.vmem [resolvable:$false] %s676_s18 }
  0x1b   : > { %s678_s19 = scalar_lea.vmem %s677_s18, 2048  ;;  %p679_p9 = scmp.lt.s32.totalorder %s795_s29, %s677_s18 }
  0x1c   : > { %p674_p10 = pnand %p672_p6, %p658_p11  ;;  %p680_p0 = scmp.lt.s32.totalorder %s678_s19, %s671_s11 }
  0x1e   : > { %p675_p12 = pneg %p674_p10  ;;  %p681_p1 = por %p680_p0, %p679_p9 }
  0x20   : > { %p682_p2 = pnand %p681_p1, %p675_p12 }
  0x22   : > { %685 = shalt.err (!%p682_p2)
}
  0x23   : > { %s723_s22 = smov 256   ;;  %s724_s23 = smov 16  }
  0x24   : > { %613 = dma.hbm_to_vmem [thread:$0]  (!%p797_p8), %s793_s27, 1024, %s795_s29, %s802_s4, %s723_s22, %s723_s22, %s724_s23  }
  0x25   : > { %p153_p11 = scmp.lt.s32.totalorder %s720_s15, 3  ;;  %p884_p13 = scmp.ge.s32.totalorder %s720_s15, 1 }
  0x27   : > { %p154_p3 = pnand %p884_p13, %p153_p11 }
  0x28   : > { %s159_s24 = sand.u32 (!%p154_p3), 1, %s712_s13  }
  0x29   : > { %157 = sbr.rel (%p154_p3) target bundleno = 794 (0x31a), region = 32  ;;  %s562_s25 = sshll.u32 (!%p154_p3), %s159_s24, 6 }
  0x2a   : > { %s160_s26 = scalar_lea.sflag (!%p154_p3), [#allocation3], %s159_s24  ;;  %s163_s28 = scalar_lea.vmem (!%p154_p3), [#allocation2], %s562_s25 }
  0x30   : > { %703 = dma.done.wait (%p784_p7), %s160_s26, 1024  }
  0x31   : > { %705 = vsyncadd (%p784_p7), %s160_s26, 4294966272  ;;  %v195_v0 = vld [vmem:[%s163_s28 + $0x20] sm:$0xff]  ;;  %v196_v1 = vld [vmem:[%s163_s28 + $0x28] sm:$0xff]  ;;  %v725_v16 = vmov 0.0   ;;  %vm290_vm0 = vcmask 261120   ;;  %vm726_vm1 = vmmov 0   ;;  %v231_v25 = vlaneseq }
  0x32   : > { %v191_v2 = vld [vmem:[%s163_s28] sm:$0xff]  ;;  %v205_v3 = vadd.f32 %v196_v1, %v195_v0  ;;  %v192_v4 = vld [vmem:[%s163_s28 + $0x8] sm:$0xff]  ;;  %v197_v5 = vld [vmem:[%s163_s28 + $0x30] sm:$0xff]  ;;  %v221_v15 = vmax.f32 %v195_v0, %v196_v1  ;;  %584 = vmatprep.subr.mxu0 %v725_v16  ;;  %586 = vmatprep.mubr.msk.f32.mxu0 %vm726_vm1, %v725_v16  ;;  %vm368_vm2 = vcmask 64512   ;;  %v727_v20 = vmov 0.0|0.0   ;;  %p186_p7 = scmp.lt.s32.totalorder %s767_s16, 1 }
  0x33   : > { %v198_v6 = vld [vmem:[%s163_s28 + $0x38] sm:$0xff]  ;;  %v199_v7 = vadd.f32 %v192_v4, %v191_v2  ;;  %v193_v8 = vld [vmem:[%s163_s28 + $0x10] sm:$0xff]  ;;  %v215_v13 = vmax.f32 %v191_v2, %v192_v4  ;;  %v285_v17 = vld [vmem:[%s879_s1] sm:$0xff]  ;;  %597 = vmatprep.mubr.msk.f32.mxu1 %vm726_vm1, %v725_v16  ;;  %600 = vmatprep.subr.bf16.mxu1 %v727_v20  ;;  %v232_v26 = vand.u32 127, %v231_v25  ;;  %v234_v29 = vshrl.u32 %v231_v25, 7 }
  0x34   : > { %v194_v9 = vld [vmem:[%s163_s28 + $0x18] sm:$0xff]  ;;  %206 = vadd.xlane.f32.xlu1 %v205_v3  ;;  %v208_v10 = vadd.f32 %v198_v6, %v197_v5  ;;  %v224_v14 = vmax.f32 %v197_v5, %v198_v6  ;;  %585 = vmatpush3.xpose.msk.msra.mxu0 %vm290_vm0, %v285_v17  ;;  %v286_v18 = vld [vmem:[%s880_s2] sm:$0xff]  ;;  %v287_v19 = vld [vmem:[%s880_s2 + $0x8] sm:$0xff]  ;;  %vm242_vm4 = vcmask 130112   ;;  %vm249_vm5 = vcmask 195712   ;;  %s890_s16 = smov (!%p186_p7, %s767_s16), 1 }
  0x35   : > { %200 = vadd.xlane.f32.xlu0 %v199_v7  ;;  %v202_v11 = vadd.f32 %v194_v9, %v193_v8  ;;  %v218_v12 = vmax.f32 %v193_v8, %v194_v9  ;;  %v601_v21 = vpack.c.bf16 %v287_v19, %v286_v18  ;;  %vm602_vm3 = vmpackc.low %vm368_vm2, %vm368_vm2  ;;  %v288_v22 = vld [vmem:[%s880_s2 + $0x10] sm:$0xff]  ;;  %v289_v23 = vld [vmem:[%s880_s2 + $0x18] sm:$0xff]  ;;  %v237_v28 = vadd.s32 4294967288, %v232_v26  ;;  %s576_s9 = sshll.u32 %s890_s16, 5 }
  0x36   : > { %v605_v24 = vpack.c.bf16 %v289_v23, %v288_v22  ;;  %v244_v31 = vadd.s32 4294967280, %v232_v26  ;;  %v235_v34 = vsub.s32 %v232_v26, %v234_v29  ;;  %v251_v36 = vadd.s32 4294967272, %v232_v26  ;;  %s190_s12 = scalar_lea.vmem %s881_s3, %s576_s9 }
  0x37   : > { %603 = vmatpush3.bf16.xpose.msk.msra.mxu1 %vm602_vm3, %v601_v21  ;;  %v240_v33 = vsub.s32 %v237_v28, %v234_v29  ;;  %vm256_vm6 = vcmask 261312   ;;  %vm283_vm7 = vcmask 1040384   ;;  %v466_v8 = vsub.s32 0, %v234_v29 }
  0x38   : > { %209 = vadd.xlane.f32.xlu1 %v208_v10  ;;  %604 = vmatprep.subr.bf16.mxu1 %v727_v20  ;;  %v247_v39 = vsub.s32 %v244_v31, %v234_v29  ;;  %v254_v44 = vsub.s32 %v251_v36, %v234_v29  ;;  %vm483_vm8 = vcmask 7168  }
  0x39   : > { %203 = vadd.xlane.f32.xlu0 %v202_v11 }
  0x3c   : > { %219 = vmax.xlane.f32.xlu1 %v218_v12 }
  0x3d   : > { %216 = vmax.xlane.f32.xlu0 %v215_v13 }
  0x3f   : > { %607 = vmatpush3.bf16.xpose.msk.msra.mxu1 %vm602_vm3, %v605_v24 }
  0x40   : > { %225 = vmax.xlane.f32.xlu1 %v224_v14 }
  0x41   : > { %222 = vmax.xlane.f32.xlu0 %v221_v15 }
  0xc1   : > { %v207_v27 = vpop.xlane.xlu1 %206 }
  0xc2   : > { %v201_v30 = vpop.xlane.xlu0 %200  ;;  %v213_v40 = vmul.f32 0.00390625, %v207_v27 }
  0xc3   : > { %v211_v35 = vmul.f32 0.00390625, %v201_v30 }
  0xc4   : > { %v248_v50 = vrot.slane %v213_v40, %v247_v39 }
  0xc5   : > { %v210_v32 = vpop.xlane.xlu1 %209  ;;  %v236_v43 = vrot.slane %v211_v35, %v235_v34 }
  0xc6   : > { %v204_v37 = vpop.xlane.xlu0 %203  ;;  %v214_v45 = vmul.f32 0.00390625, %v210_v32 }
  0xc7   : > { %v212_v38 = vmul.f32 0.00390625, %v204_v37 }
  0xc8   : > { %v255_v52 = vrot.slane %v214_v45, %v254_v44 }
  0xc9   : > { %v241_v41 = vrot.slane %v212_v38, %v240_v33  ;;  %v220_v42 = vpop.xlane.xlu1 %219 }
  0xca   : > { %v217_v46 = vpop.xlane.xlu0 %216  ;;  %v270_v48 = vrot.slane %v220_v42, %v240_v33 }
  0xcb   : > { %v243_v47 = vsel %vm242_vm4, %v241_v41, %v236_v43  ;;  %v266_v49 = vrot.slane %v217_v46, %v235_v34 }
  0xcc   : > { %v250_v56 = vsel %vm249_vm5, %v248_v50, %v243_v47 }
  0xcd   : > { %v226_v51 = vpop.xlane.xlu1 %225  ;;  %v271_v57 = vsel %vm242_vm4, %v270_v48, %v266_v49  ;;  %v257_v60 = vsel %vm256_vm6, %v255_v52, %v250_v56 }
  0xce   : > { %v223_v53 = vpop.xlane.xlu0 %222  ;;  %v280_v54 = vrot.slane %v226_v51, %v254_v44 }
  0xcf   : > { %v275_v55 = vrot.slane %v223_v53, %v247_v39 }
  0xd1   : > { %v276_v58 = vsel %vm249_vm5, %v275_v55, %v271_v57 }
  0xd2   : > { %v281_v59 = vsel %vm256_vm6, %v280_v54, %v276_v58 }
  0xd3   : > { %v284_v61 = vsel %vm283_vm7, %v257_v60, %v281_v59 }
  0xd4   : > { %587 = vmatmul.mubr.msk.f32.vlgmr.msra.gmra.mrb[0].mxu0 %vm290_vm0, %v284_v61 }
 0x1a7   : > { %v363_v62 = vpop.f32.mrb[0].mxu0 }
 0x1a8   : > { %v367_v63 = vmax.f32 %v363_v62, 0.0  ;;  %v588_v0 = vpop.f32.mrb[1].mxu0 }
 0x1aa   : > { %598 = vmatmul.mubr.msk.f32.vlgmr.msra.gmra.mrb[0].mxu1 %vm368_vm2, %v367_v63 }
 0x27d   : > { %v450_v1 = vpop.f32.mrb[0].mxu1 }
 0x27e   : > { %v455_v2 = vrot.slane %v450_v1, 1  ;;  %v599_v3 = vpop.f32.mrb[1].mxu1 }
 0x280   : > { %v457_v4 = vadd.f32 %v455_v2, %v450_v1 }
 0x282   : > { %v572_v5 = vmul.f32 -1.442695, %v457_v4 }
 0x284   : > { %652 = vpow2.f32 %v572_v5 }
 0x28e   : > { %v653_v6 = vpop.eup %652 }
 0x28f   : > { %v461_v7 = vadd.f32 1.0, %v653_v6 }
 0x291   : > { %654 = vrcp.f32 %v461_v7 }
 0x29b   : > { %v655_v9 = vpop.eup %654 }
 0x29c   : > { %v467_v10 = vrot.slane %v655_v9, %v466_v8 }
 0x29e   : > { %473 = vbcast.lane.b32.xlu1 %v467_v10, 264  ;;  %469 = vbcast.lane.b32.xlu0 %v467_v10, 256 }
 0x2a2   : > { %477 = vbcast.lane.b32.xlu1 %v467_v10, 272 }
 0x2a6   : > { %481 = vbcast.lane.b32.xlu1 %v467_v10, 280 }
 0x310   : > { %v474_v11 = vpop.permute.xlu1 %473  ;;  %v470_v12 = vpop.permute.xlu0 %469 }
 0x311   : > { %485 = vst.msk [vmem:[%s190_s12 + $0x8] sm:$0xff] %vm483_vm8, %v474_v11  ;;  %484 = vst.msk [vmem:[%s190_s12] sm:$0xff] %vm483_vm8, %v470_v12 }
 0x314   : > { %v478_v13 = vpop.permute.xlu1 %477 }
 0x315   : > { %486 = vst.msk [vmem:[%s190_s12 + $0x10] sm:$0xff] %vm483_vm8, %v478_v13 }
 0x318   : > { %v482_v14 = vpop.permute.xlu1 %481 }
 0x319   : > { %487 = vst.msk [vmem:[%s190_s12 + $0x18] sm:$0xff] %vm483_vm8, %v482_v14 }
 0x31a PF: > { %p13_p8 = scmp.ge.s32.totalorder %s770_s17, 4   ;;  %s885_s12 = smov %s712_s13 }
 0x31b   : > { %s886_s13 = smov %s716_s14  ;;  %s887_s14 = smov %s780_s20 }
 0x31c   : > { %s888_s15 = smov %s770_s17  ;;  %15 = sbr.rel (!%p13_p8) target bundleno = 3 (0x3), region = 72 }
 0x323   :  { %509 = vsyncpa [#allocation3], 1 }
 0x324   :  { %511 = vsyncpa [#allocation3 + $0x1], 1 }

</bundles_post_ra>
